<compile_context>
chip_gen: v7x
topology: tpu7x:2x2x1
jax: 0.10.0
libtpu: 0.0.40
codegen_flags: <defaults>
</compile_context>

<pallas_src>
import jax
import jax.numpy as jnp
from jax.experimental import pallas as pl
from jax.experimental.pallas import tpu as pltpu


def _round_up(x, m):
    return ((x + m - 1) // m) * m


def _uniform_sampler_kernel(rays_ref, steps_ref, ts_ref, pos_ref):
    # rays_ref  : (TR, 8)    cols 0:3 origin, 3:6 direction, 6 near, 7 far
    # steps_ref : (1, S_pad) grid-invariant ramp (s + 0.5) / num_samples
    # ts_ref    : (TR, S_pad)
    # pos_ref   : (3, TR, S_pad)
    near = rays_ref[:, 6:7]                     # (TR, 1)
    far = rays_ref[:, 7:8]                      # (TR, 1)
    steps = steps_ref[...]                      # (1, S_pad)

    t = near + (far - near) * steps             # (TR, S_pad) lane-broadcast FMA
    ts_ref[...] = t

    # Per-component FMAs: pure VPU lane broadcasts; each store is a dense,
    # unmasked (TR, S_pad) slab.
    for c in range(3):
        o_c = rays_ref[:, c:c + 1]              # (TR, 1)
        d_c = rays_ref[:, 3 + c:4 + c]          # (TR, 1)
        pos_ref[c, :, :] = o_c + d_c * t


def uniform_ray_sampler(origins, directions, nears, fars, num_samples,
                        ray_tile=256):
    """Deterministic uniform sampler along rays (Pallas TPU kernel).

    Args:
      origins:     (num_rays, 3) float
      directions:  (num_rays, 3) float
      nears:       (num_rays, 1) float
      fars:        (num_rays, 1) float
      num_samples: int, samples per ray

    Returns:
      ts:        (num_rays, num_samples) float32 sample distances
      positions: (3, num_rays, num_samples) float32,
                 positions[c, r, s] = origins[r, c] + directions[r, c]*ts[r, s]
    """
    num_rays = origins.shape[0]

    # Lane axis (samples) padded to a multiple of 128 -> dense vector stores.
    s_pad = max(128, _round_up(num_samples, 128))

    # Clamp / align the ray tile to the problem size and to the sublane (8).
    ray_tile = max(8, min(_round_up(ray_tile, 8), _round_up(num_rays, 8)))
    # Keep the double-buffered output footprint (2 bufs x 4 rows-of-S_pad x
    # f32) well inside the scoped VMEM limit (v7x has only 64 MiB physical).
    while ray_tile > 8 and 2 * 4 * ray_tile * s_pad * 4 > (16 << 20):
        ray_tile //= 2
    ray_tile = max(8, _round_up(ray_tile, 8))
    r_pad = _round_up(num_rays, ray_tile)

    # Pack the four tiny per-ray inputs into one (R, 8) array -> 1 DMA/step.
    rays = jnp.concatenate(
        [origins.astype(jnp.float32),
         directions.astype(jnp.float32),
         nears.astype(jnp.float32),
         fars.astype(jnp.float32)], axis=1)                      # (R, 8)
    if r_pad != num_rays:
        rays = jnp.pad(rays, ((0, r_pad - num_rays), (0, 0)))

    # Grid-invariant bin-midpoint ramp, computed once (padded lanes harmless).
    steps = ((jnp.arange(s_pad, dtype=jnp.float32) + 0.5)
             / float(num_samples))[None, :]                      # (1, S_pad)

    grid = (r_pad // ray_tile,)

    ts_full, pos_full = pl.pallas_call(
        _uniform_sampler_kernel,
        out_shape=(
            jax.ShapeDtypeStruct((r_pad, s_pad), jnp.float32),
            jax.ShapeDtypeStruct((3, r_pad, s_pad), jnp.float32),
        ),
        grid_spec=pl.GridSpec(
            grid=grid,
            in_specs=[
                pl.BlockSpec((ray_tile, 8), lambda i: (i, 0)),
                pl.BlockSpec((1, s_pad), lambda i: (0, 0)),
            ],
            out_specs=(
                pl.BlockSpec((ray_tile, s_pad), lambda i: (i, 0)),
                pl.BlockSpec((3, ray_tile, s_pad), lambda i: (0, i, 0)),
            ),
        ),
        compiler_params=pltpu.CompilerParams(
            dimension_semantics=("parallel",),
            vmem_limit_bytes=64 << 20),
    )(rays, steps)

    ts = ts_full[:num_rays, :num_samples]
    positions = pos_full[:, :num_rays, :num_samples]
    return ts, positions


def _reference(origins, directions, nears, fars, num_samples):
    s = (jnp.arange(num_samples, dtype=jnp.float32) + 0.5) / num_samples
    t = nears + (fars - nears) * s[None, :]                       # (R, S)
    pos = (origins.T[:, :, None]
           + directions.T[:, :, None] * t[None, :, :])            # (3, R, S)
    return t, pos


if __name__ == "__main__":
    key = jax.random.PRNGKey(0)
    k0, k1, k2, k3 = jax.random.split(key, 4)

    num_rays = 16
    num_samples = 8

    origins = jax.random.normal(k0, (num_rays, 3), dtype=jnp.float32)
    directions = jax.random.normal(k1, (num_rays, 3), dtype=jnp.float32)
    directions = directions / jnp.linalg.norm(directions, axis=-1, keepdims=True)
    nears = jax.random.uniform(k2, (num_rays, 1), minval=0.1, maxval=0.5)
    fars = nears + jax.random.uniform(k3, (num_rays, 1), minval=1.0, maxval=4.0)

    ts, positions = uniform_ray_sampler(origins, directions, nears, fars,
                                        num_samples)
    jax.block_until_ready((ts, positions))

    ts_ref, pos_ref = _reference(origins, directions, nears, fars, num_samples)
    assert ts.shape == (num_rays, num_samples)
    assert positions.shape == (3, num_rays, num_samples)
    assert jnp.allclose(ts, ts_ref, atol=1e-5, rtol=1e-5)
    assert jnp.allclose(positions, pos_ref, atol=1e-5, rtol=1e-5)

    print("KERNEL_OK")
</pallas_src>

<mosaic_0001>
module attributes {stable_mosaic.version = 11 : i64} {
  func.func @_uniform_sampler_kernel(%arg0: i32, %arg1: memref<16x8xf32, #tpu.memory_space<vmem>>, %arg2: memref<1x128xf32, #tpu.memory_space<vmem>>, %arg3: memref<16x128xf32, #tpu.memory_space<vmem>>, %arg4: memref<3x16x128xf32, #tpu.memory_space<vmem>>) attributes {dimension_semantics = [#tpu.dimension_semantics<parallel>], iteration_bounds = array<i64: 1>, scalar_prefetch = 0 : i64, scratch_operands = 0 : i64, tpu.core_type = #tpu.core_type<tc>, window_params = [{transform_indices = @transform_0, window_bounds = array<i64: 16, 8>}, {pipeline_mode = #tpu.pipeline_mode<synchronous>, transform_indices = @transform_1, window_bounds = array<i64: 1, 128>}, {transform_indices = @transform_2, window_bounds = array<i64: 16, 128>}, {transform_indices = @transform_3, window_bounds = array<i64: 3, 16, 128>}]} {
    %c0 = arith.constant 0 : index
    %c6 = arith.constant 6 : index
    %0 = vector.load %arg1[%c0, %c6] : memref<16x8xf32, #tpu.memory_space<vmem>>, vector<16x1xf32>
    %c0_0 = arith.constant 0 : index
    %c7 = arith.constant 7 : index
    %1 = vector.load %arg1[%c0_0, %c7] : memref<16x8xf32, #tpu.memory_space<vmem>>, vector<16x1xf32>
    %c0_1 = arith.constant 0 : index
    %c0_2 = arith.constant 0 : index
    %2 = vector.load %arg2[%c0_1, %c0_2] : memref<1x128xf32, #tpu.memory_space<vmem>>, vector<1x128xf32>
    %3 = arith.subf %1, %0 : vector<16x1xf32>
    %4 = vector.broadcast %3 : vector<16x1xf32> to vector<16x128xf32>
    %5 = vector.broadcast %2 : vector<1x128xf32> to vector<16x128xf32>
    %6 = arith.mulf %4, %5 : vector<16x128xf32>
    %7 = vector.broadcast %0 : vector<16x1xf32> to vector<16x128xf32>
    %8 = arith.addf %7, %6 : vector<16x128xf32>
    %c0_3 = arith.constant 0 : index
    %c0_4 = arith.constant 0 : index
    %9 = vector.load %arg3[%c0_3, %c0_4] : memref<16x128xf32, #tpu.memory_space<vmem>>, vector<16x128xf32>
    tpu.vector_store %arg3[%c0_3, %c0_4], %8 {strides = array<i32>} : memref<16x128xf32, #tpu.memory_space<vmem>>, vector<16x128xf32>,
    %c0_5 = arith.constant 0 : index
    %c0_6 = arith.constant 0 : index
    %10 = vector.load %arg1[%c0_5, %c0_6] : memref<16x8xf32, #tpu.memory_space<vmem>>, vector<16x1xf32>
    %c0_7 = arith.constant 0 : index
    %c3 = arith.constant 3 : index
    %11 = vector.load %arg1[%c0_7, %c3] : memref<16x8xf32, #tpu.memory_space<vmem>>, vector<16x1xf32>
    %12 = vector.broadcast %11 : vector<16x1xf32> to vector<16x128xf32>
    %13 = arith.mulf %12, %8 : vector<16x128xf32>
    %14 = vector.broadcast %10 : vector<16x1xf32> to vector<16x128xf32>
    %15 = arith.addf %14, %13 : vector<16x128xf32>
    %c0_8 = arith.constant 0 : index
    %c0_9 = arith.constant 0 : index
    %c0_10 = arith.constant 0 : index
    %16 = vector.load %arg4[%c0_8, %c0_9, %c0_10] : memref<3x16x128xf32, #tpu.memory_space<vmem>>, vector<1x16x128xf32>
    %17 = vector.shape_cast %16 : vector<1x16x128xf32> to vector<16x128xf32>
    %18 = vector.shape_cast %15 : vector<16x128xf32> to vector<1x16x128xf32>
    tpu.vector_store %arg4[%c0_8, %c0_9, %c0_10], %18 {strides = array<i32>} : memref<3x16x128xf32, #tpu.memory_space<vmem>>, vector<1x16x128xf32>,
    %c0_11 = arith.constant 0 : index
    %c1 = arith.constant 1 : index
    %19 = vector.load %arg1[%c0_11, %c1] : memref<16x8xf32, #tpu.memory_space<vmem>>, vector<16x1xf32>
    %c0_12 = arith.constant 0 : index
    %c4 = arith.constant 4 : index
    %20 = vector.load %arg1[%c0_12, %c4] : memref<16x8xf32, #tpu.memory_space<vmem>>, vector<16x1xf32>
    %21 = vector.broadcast %20 : vector<16x1xf32> to vector<16x128xf32>
    %22 = arith.mulf %21, %8 : vector<16x128xf32>
    %23 = vector.broadcast %19 : vector<16x1xf32> to vector<16x128xf32>
    %24 = arith.addf %23, %22 : vector<16x128xf32>
    %c1_13 = arith.constant 1 : index
    %c0_14 = arith.constant 0 : index
    %c0_15 = arith.constant 0 : index
    %25 = vector.load %arg4[%c1_13, %c0_14, %c0_15] : memref<3x16x128xf32, #tpu.memory_space<vmem>>, vector<1x16x128xf32>
    %26 = vector.shape_cast %25 : vector<1x16x128xf32> to vector<16x128xf32>
    %27 = vector.shape_cast %24 : vector<16x128xf32> to vector<1x16x128xf32>
    tpu.vector_store %arg4[%c1_13, %c0_14, %c0_15], %27 {strides = array<i32>} : memref<3x16x128xf32, #tpu.memory_space<vmem>>, vector<1x16x128xf32>,
    %c0_16 = arith.constant 0 : index
    %c2 = arith.constant 2 : index
    %28 = vector.load %arg1[%c0_16, %c2] : memref<16x8xf32, #tpu.memory_space<vmem>>, vector<16x1xf32>
    %c0_17 = arith.constant 0 : index
    %c5 = arith.constant 5 : index
    %29 = vector.load %arg1[%c0_17, %c5] : memref<16x8xf32, #tpu.memory_space<vmem>>, vector<16x1xf32>
    %30 = vector.broadcast %29 : vector<16x1xf32> to vector<16x128xf32>
    %31 = arith.mulf %30, %8 : vector<16x128xf32>
    %32 = vector.broadcast %28 : vector<16x1xf32> to vector<16x128xf32>
    %33 = arith.addf %32, %31 : vector<16x128xf32>
    %c2_18 = arith.constant 2 : index
    %c0_19 = arith.constant 0 : index
    %c0_20 = arith.constant 0 : index
    %34 = vector.load %arg4[%c2_18, %c0_19, %c0_20] : memref<3x16x128xf32, #tpu.memory_space<vmem>>, vector<1x16x128xf32>
    %35 = vector.shape_cast %34 : vector<1x16x128xf32> to vector<16x128xf32>
    %36 = vector.shape_cast %33 : vector<16x128xf32> to vector<1x16x128xf32>
    tpu.vector_store %arg4[%c2_18, %c0_19, %c0_20], %36 {strides = array<i32>} : memref<3x16x128xf32, #tpu.memory_space<vmem>>, vector<1x16x128xf32>,
    return
  }
  func.func @transform_0(%arg0: i32) -> (i32, i32) {
    %c0_i32 = arith.constant 0 : i32
    %c0_i32_0 = arith.constant 0 : i32
    return %arg0, %c0_i32 : i32, i32
  }
  func.func @transform_1(%arg0: i32) -> (i32, i32) {
    %c0_i32 = arith.constant 0 : i32
    %c0_i32_0 = arith.constant 0 : i32
    %c0_i32_1 = arith.constant 0 : i32
    return %c0_i32, %c0_i32_0 : i32, i32
  }
  func.func @transform_2(%arg0: i32) -> (i32, i32) {
    %c0_i32 = arith.constant 0 : i32
    %c0_i32_0 = arith.constant 0 : i32
    return %arg0, %c0_i32 : i32, i32
  }
  func.func @transform_3(%arg0: i32) -> (i32, i32, i32) {
    %c0_i32 = arith.constant 0 : i32
    %c0_i32_0 = arith.constant 0 : i32
    %c0_i32_1 = arith.constant 0 : i32
    return %c0_i32, %arg0, %c0_i32_0 : i32, i32, i32
  }
}

</mosaic_0001>

<bundles_post_ra>
// kernel: tpu_custom_call.1
= control target key start
LH: loop header
LB: loop body
LE: loop exit
PB: predicated region body
PF: predicated region fallthrough
CT: control target
= control target key end

     0   :  { %9 = vsyncpa [#allocation3], 0  ;;  %s416_s0 = inlined_call_operand.hbm [shape: f32[16,8], index: 0, kind: input, shape index: {}]   ;;  %s417_s1 = inlined_call_operand.hbm [shape: f32[1,128], index: 1, kind: input, shape index: {}]   ;;  %s418_s2 = inlined_call_operand.hbm [shape: f32[16,128], index: 2, kind: output, shape index: {0}]   ;;  %s419_s3 = inlined_call_operand.hbm [shape: f32[3,16,128], index: 3, kind: output, shape index: {1}]  }
   0x1   :  { %10 = vsyncpa [#allocation6], 0 }
   0x2   :  { %11 = vsyncpa [#allocation4], 0 }
   0x3   :  { %12 = vsyncpa [#allocation9], 0  ;;  %s324_s12 = smov [#allocation2]   ;;  %s228_s16 = scalar_lea.hbm %s416_s0, 256 }
   0x4   :  { %s18_s13 = sshll.u32 %s324_s12, 4  ;;  %p229_p0 = scmp.ne.s32.totalorder %s416_s0, %s228_s16  ;;  %s19_s13 = int_to_ptr.vmem [resolvable:$true] %s18_s13 }
   0x5   :  { %p232_p1 = scmp.lt.u32.totalorder %s228_s16, %s416_s0 }
   0x7   :  { %p234_p2 = pnand %p232_p1, %p229_p0 }
   0x9   :  { %237 = shalt.err (!%p234_p2)
}
   0xa   :  { %s238_s21 = scalar_lea.vmem %s19_s13, 256  ;;  %p243_p4 = scmp.lt.s32.totalorder %s19_s13, %s19_s13 }
   0xb   :  { %p239_p3 = scmp.ne.s32.totalorder %s19_s13, %s238_s21  ;;  %p244_p5 = scmp.lt.s32.totalorder %s238_s21, %s238_s21 }
   0xd   :  { %p245_p6 = por %p244_p5, %p243_p4 }
   0xf   :  { %p246_p7 = pnand %p245_p6, %p239_p3 }
  0x11   :  { %249 = shalt.err (!%p246_p7)
}
  0x12   :  { %s325_s22 = smov 128   ;;  %s326_s23 = smov 8  }
  0x13   :  { %24 = dma.hbm_to_vmem [thread:$0]  %s416_s0, 256, %s19_s13, [#allocation3], %s325_s22, %s325_s22, %s326_s23  }
  0x14   :  { %s327_s26 = smov [#allocation5]   ;;  %s250_s30 = scalar_lea.hbm %s417_s1, 16 }
  0x15   :  { %s31_s27 = sshll.u32 %s327_s26, 4  ;;  %p251_p8 = scmp.ne.s32.totalorder %s417_s1, %s250_s30  ;;  %s32_s27 = int_to_ptr.vmem [resolvable:$true] %s31_s27 }
  0x16   :  { %p254_p9 = scmp.lt.u32.totalorder %s250_s30, %s417_s1 }
  0x18   :  { %p256_p10 = pnand %p254_p9, %p251_p8 }
  0x1a   :  { %259 = shalt.err (!%p256_p10)
}
  0x1b   :  { %s260_s8 = scalar_lea.vmem %s32_s27, 16  ;;  %s264_s0 = scalar_lea.vmem %s32_s27, 32 }
  0x1c   :  { %p261_p11 = scmp.ne.s32.totalorder %s32_s27, %s260_s8  ;;  %p265_p12 = scmp.lt.s32.totalorder %s32_s27, %s32_s27 }
  0x1d   :  { %p266_p13 = scmp.lt.s32.totalorder %s264_s0, %s260_s8 }
  0x1f   :  { %p267_p0 = por %p266_p13, %p265_p12 }
  0x21   :  { %p268_p1 = pnand %p267_p0, %p261_p11 }
  0x23   :  { %271 = shalt.err (!%p268_p1)
}
  0x24   :  { %34 = dma.hbm_to_vmem [thread:$0]  %s417_s1, 16, %s32_s27, [#allocation6]  }
  0x25   :  { %316 = dma.done.wait [#allocation3], 256  }
  0x26   :  { %317 = vsyncadd [#allocation3], 4294967040 }
  0x27   :  { %318 = dma.done.wait [#allocation6], 16  }
  0x28   :  { %319 = vsyncadd [#allocation6], 4294967280  ;;  %v328_v0 = vmov 6   ;;  %v41_v1 = vld [vmem:[#allocation2] sm:$0xff]  ;;  %v42_v2 = vld [vmem:[#allocation2 + $0x8] sm:$0xff]  ;;  %s329_s11 = smov 1  }
  0x29   :  { %215 = vset.pattern.permute.xlu1 %v328_v0  ;;  %214 = vset.pattern.permute.xlu0 %v328_v0  ;;  %v330_v3 = vmov 3   ;;  %v331_v4 = vmov 4   ;;  %v332_v5 = vmov 5   ;;  %v333_v6 = vmov 0   ;;  %v198_v24 = vld [vmem:[#allocation5] ss:$0 sm:$0xff] }
  0x2a   :  { %46 = vrot.lane.b32.xlu0 %v41_v1, %s329_s11  ;;  %77 = vperm.xlu1 %215, %v42_v2   ;;  %v334_v7 = vmov 2   ;;  %v335_v8 = vmov 1   ;;  %v336_v9 = vmov 7   ;;  %s337_s1 = smov [#allocation7]  }
  0x2b   :  { %s169_s12 = sshll.u32 %s337_s1, 4  ;;  %s170_s12 = int_to_ptr.vmem [resolvable:$true] %s169_s12 }
  0x2c   :  { %s272_s13 = scalar_lea.vmem %s170_s12, 256  ;;  %p277_p3 = scmp.lt.s32.totalorder %s170_s12, %s170_s12 }
  0x2d   :  { %p273_p2 = scmp.ne.s32.totalorder %s170_s12, %s272_s13  ;;  %p278_p4 = scmp.lt.s32.totalorder %s272_s13, %s272_s13 }
  0x2e   :  { %48 = vrot.lane.b32.xlu0 %v42_v2, %s329_s11  ;;  %216 = vset.pattern.permute.xlu1 %v330_v3 }
  0x2f   :  { %88 = vperm.xlu1 %216, %v41_v1   ;;  %p279_p5 = por %p278_p4, %p277_p3 }
  0x31   :  { %p280_p6 = pnand %p279_p5, %p273_p2 }
  0x32   :  { %73 = vperm.xlu0 %214, %v41_v1  }
  0x33   :  { %218 = vset.pattern.permute.xlu1 %v331_v4 }
  0x34   :  { %114 = vperm.xlu1 %218, %v41_v1  }
  0x36   :  { %217 = vset.pattern.permute.xlu0 %v330_v3 }
  0x37   :  { %93 = vperm.xlu0 %217, %v42_v2  }
  0x38   :  { %119 = vperm.xlu1 %218, %v42_v2  }
  0x3b   :  { %219 = vset.pattern.permute.xlu0 %v332_v5 }
  0x3c   :  { %220 = vset.pattern.permute.xlu1 %v332_v5  ;;  %141 = vperm.xlu0 %219, %v41_v1  }
  0x3d   :  { %146 = vperm.xlu1 %220, %v42_v2  }
  0x40   :  { %222 = vset.pattern.permute.xlu0 %v333_v6 }
  0x41   :  { %221 = vset.pattern.permute.xlu1 %v333_v6  ;;  %103 = vperm.xlu0 %222, %v42_v2  }
  0x42   :  { %99 = vperm.xlu1 %221, %v41_v1  }
  0x45   :  { %226 = vset.pattern.permute.xlu0 %v334_v7 }
  0x46   :  { %223 = vset.pattern.permute.xlu1 %v335_v8  ;;  %152 = vperm.xlu0 %226, %v41_v1  }
  0x47   :  { %125 = vperm.xlu1 %223, %v41_v1  }
  0x4b   :  { %224 = vset.pattern.permute.xlu1 %v336_v9 }
  0x9c   :  { %v47_v10 = vpop.permute.xlu0 %46 }
  0x9d   :  { %v52_v11 = vsub.f32 %v41_v1, %v47_v10 }
  0x9f   :  { %56 = vperm.xlu1 %224, %v52_v11  }
  0xa0   :  { %v49_v12 = vpop.permute.xlu0 %48 }
  0xa1   :  { %v53_v13 = vsub.f32 %v42_v2, %v49_v12 }
  0xa3   :  { %61 = vperm.xlu1 %224, %v53_v13  }
  0xa7   :  { %225 = vset.pattern.permute.xlu1 %v335_v8 }
  0xa8   :  { %129 = vperm.xlu1 %225, %v42_v2  }
  0xa9   :  { %v78_v14 = vpop.permute.xlu1 %77 }
  0xac   :  { %227 = vset.pattern.permute.xlu1 %v334_v7 }
  0xad   :  { %156 = vperm.xlu1 %227, %v42_v2  }
  0xae   :  { %v89_v15 = vpop.permute.xlu1 %88 }
  0xb1   :  { %v74_v18 = vpop.permute.xlu0 %73 }
  0xb3   :  { %v115_v16 = vpop.permute.xlu1 %114 }
  0xb6   :  { %v94_v20 = vpop.permute.xlu0 %93 }
  0xb7   :  { %v120_v17 = vpop.permute.xlu1 %119 }
  0xbb   :  { %v142_v22 = vpop.permute.xlu0 %141 }
  0xbc   :  { %v147_v19 = vpop.permute.xlu1 %146 }
  0xc0   :  { %v104_v25 = vpop.permute.xlu0 %103 }
  0xc1   :  { %v100_v21 = vpop.permute.xlu1 %99 }
  0xc5   :  { %v153_v30 = vpop.permute.xlu0 %152 }
  0xc6   :  { %v126_v23 = vpop.permute.xlu1 %125 }
 0x11e   :  { %v57_v26 = vpop.permute.xlu1 %56 }
 0x11f   :  { %v70_v27 = vmul.f32 %v198_v24, %v57_v26 }
 0x121   :  { %v80_v28 = vadd.f32 %v74_v18, %v70_v27 }
 0x122   :  { %v62_v29 = vpop.permute.xlu1 %61 }
 0x123   :  { %v96_v31 = vmul.f32 %v89_v15, %v80_v28  ;;  %v122_v32 = vmul.f32 %v115_v16, %v80_v28  ;;  %82 = vst [vmem:[#allocation7] sm:$0xff] %v80_v28  ;;  %v71_v33 = vmul.f32 %v198_v24, %v62_v29  ;;  %v149_v34 = vmul.f32 %v142_v22, %v80_v28 }
 0x125   :  { %v106_v35 = vadd.f32 %v100_v21, %v96_v31  ;;  %v132_v36 = vadd.f32 %v126_v23, %v122_v32  ;;  %v81_v37 = vadd.f32 %v78_v14, %v71_v33  ;;  %v159_v38 = vadd.f32 %v153_v30, %v149_v34 }
 0x127   :  { %108 = vst [vmem:[#allocation8] sm:$0xff] %v106_v35  ;;  %135 = vst [vmem:[#allocation8 + $0x10] sm:$0xff] %v132_v36  ;;  %v97_v39 = vmul.f32 %v94_v20, %v81_v37  ;;  %v123_v40 = vmul.f32 %v120_v17, %v81_v37  ;;  %v130_v41 = vpop.permute.xlu1 %129 }
 0x128   :  { %83 = vst [vmem:[#allocation7 + $0x8] sm:$0xff] %v81_v37  ;;  %162 = vst [vmem:[#allocation8 + $0x20] sm:$0xff] %v159_v38 }
 0x129   :  { %283 = shalt.err (!%p280_p6)
}
 0x12a   :  { %s284_s16 = scalar_lea.hbm %s418_s2, 256 }
 0x12b   :  { %p285_p7 = scmp.ne.s32.totalorder %s418_s2, %s284_s16  ;;  %p288_p8 = scmp.lt.u32.totalorder %s284_s16, %s418_s2 }
 0x12d   :  { %p290_p9 = pnand %p288_p8, %p285_p7 }
 0x12f   :  { %293 = shalt.err (!%p290_p9)
}
 0x130   :  { %175 = dma.vmem_to_hbm [thread:$0]  %s170_s12, 256, %s418_s2, [#allocation4], %s325_s22, %s325_s22, %s326_s23   ;;  %v107_v42 = vadd.f32 %v104_v25, %v97_v39  ;;  %v133_v43 = vadd.f32 %v130_v41, %v123_v40  ;;  %v150_v44 = vmul.f32 %v147_v19, %v81_v37  ;;  %v157_v45 = vpop.permute.xlu1 %156 }
 0x131   :  { %s338_s25 = smov [#allocation8]  }
 0x132   :  { %s181_s26 = sshll.u32 %s338_s25, 4  ;;  %109 = vst [vmem:[#allocation8 + $0x8] sm:$0xff] %v107_v42  ;;  %136 = vst [vmem:[#allocation8 + $0x18] sm:$0xff] %v133_v43  ;;  %v160_v46 = vadd.f32 %v157_v45, %v150_v44  ;;  %s182_s26 = int_to_ptr.vmem [resolvable:$true] %s181_s26 }
 0x133   :  { %s294_s27 = scalar_lea.vmem %s182_s26, 768  ;;  %p299_p11 = scmp.lt.s32.totalorder %s182_s26, %s182_s26 }
 0x134   :  { %163 = vst [vmem:[#allocation8 + $0x28] sm:$0xff] %v160_v46  ;;  %p295_p10 = scmp.ne.s32.totalorder %s182_s26, %s294_s27  ;;  %p300_p12 = scmp.lt.s32.totalorder %s294_s27, %s294_s27 }
 0x136   :  { %p301_p13 = por %p300_p12, %p299_p11 }
 0x138   :  { %p302_p0 = pnand %p301_p13, %p295_p10 }
 0x13a   :  { %305 = shalt.err (!%p302_p0)
}
 0x13b   :  { %s306_s29 = scalar_lea.hbm %s419_s3, 768 }
 0x13c   :  { %p307_p1 = scmp.ne.s32.totalorder %s419_s3, %s306_s29  ;;  %p310_p2 = scmp.lt.u32.totalorder %s306_s29, %s419_s3 }
 0x13e   :  { %p312_p3 = pnand %p310_p2, %p307_p1 }
 0x140   :  { %315 = shalt.err (!%p312_p3)
}
 0x141   :  { %187 = dma.vmem_to_hbm [thread:$0]  %s182_s26, 768, %s419_s3, [#allocation9], %s325_s22, %s325_s22, %s326_s23  }
 0x142   :  { %320 = dma.done.wait [#allocation4], 256  }
 0x143   :  { %321 = vsyncadd [#allocation4], 4294967040 }
 0x144   :  { %322 = dma.done.wait [#allocation9], 768  }
 0x145   :  { %323 = vsyncadd [#allocation9], 4294966528 }
 0x146   :  { %194 = vsyncpa [#allocation3], 1 }
 0x147   :  { %195 = vsyncpa [#allocation6], 1 }
 0x148   :  { %196 = vsyncpa [#allocation4], 1 }
 0x149   :  { %197 = vsyncpa [#allocation9], 1 }

</bundles_post_ra>
